<compile_context>
chip_gen: v7x
topology: tpu7x:2x2x1
jax: 0.10.0
libtpu: 0.0.40
codegen_flags: <defaults>
</compile_context>

<pallas_src>
import functools
import math

import jax
import jax.numpy as jnp
from jax.experimental import pallas as pl
from jax.experimental.pallas import tpu as pltpu

NUM_HEADS = 4
_VMEM_LIMIT = 32 * 1024 * 1024  # safe scoped-VMEM budget on v5e/v6e/v7x

_VMEM_FULL = pl.BlockSpec(memory_space=pltpu.MemorySpace.VMEM)


def _tile(dim: int, cap: int) -> int:
    """Largest tile <= cap that exactly divides dim (multiples of 128), else dim.

    TODO(synk): for dims > cap that are not multiples of 128 this falls back to
    the full dim; production callers should pad M/S to a multiple of 128 instead.
    """
    if dim <= cap:
        return dim
    t = (cap // 128) * 128
    while t >= 128:
        if dim % t == 0:
            return t
        t -= 128
    return dim


# ----------------------------------------------------------------------------
# Fused LayerNorm -> Q/K/V projections (1/sqrt(Dh) pre-folded into w_q, b_q)
# ----------------------------------------------------------------------------
def _ln_qkv_kernel(x_ref, g_ref, bln_ref, wq_ref, wk_ref, wv_ref,
                   bq_ref, bk_ref, bv_ref, q_ref, k_ref, v_ref, hln_ref, *, eps):
    @pl.when(pl.program_id(1) == 0)
    def _():
        x = x_ref[...].astype(jnp.float32)
        mu = jnp.mean(x, axis=-1, keepdims=True)
        var = jnp.mean(jnp.square(x - mu), axis=-1, keepdims=True)
        ln = (x - mu) * jax.lax.rsqrt(var + eps) * g_ref[...] + bln_ref[...]
        hln_ref[...] = ln.astype(hln_ref.dtype)

    h = hln_ref[...]
    q_ref[...] = (jnp.dot(h, wq_ref[...], preferred_element_type=jnp.float32)
                  + bq_ref[...]).astype(q_ref.dtype)
    k_ref[...] = (jnp.dot(h, wk_ref[...], preferred_element_type=jnp.float32)
                  + bk_ref[...]).astype(k_ref.dtype)
    v_ref[...] = (jnp.dot(h, wv_ref[...], preferred_element_type=jnp.float32)
                  + bv_ref[...]).astype(v_ref.dtype)


def ln_qkv(x2d, g, bln, wq, wk, wv, bq, bk, bv, eps=1e-5):
    M, D = x2d.shape
    tm, tn = _tile(M, 512), _tile(D, 512)   # tm=512: above DMA ridge, fits v7x VMEM
    grid = (M // tm, D // tn)
    spec_x = pl.BlockSpec((tm, D), lambda i, j: (i, 0))
    spec_ln = pl.BlockSpec((1, D), lambda i, j: (0, 0))
    spec_w = pl.BlockSpec((D, tn), lambda i, j: (0, j))
    spec_b = pl.BlockSpec((1, tn), lambda i, j: (0, j))
    spec_o = pl.BlockSpec((tm, tn), lambda i, j: (i, j))
    out_sd = jax.ShapeDtypeStruct((M, D), jnp.bfloat16)
    return pl.pallas_call(
        functools.partial(_ln_qkv_kernel, eps=eps),
        grid=grid,
        in_specs=[spec_x, spec_ln, spec_ln,
                  spec_w, spec_w, spec_w,
                  spec_b, spec_b, spec_b],
        out_specs=(spec_o, spec_o, spec_o),
        out_shape=(out_sd, out_sd, out_sd),
        scratch_shapes=[pltpu.VMEM((tm, D), jnp.bfloat16)],
        compiler_params=pltpu.CompilerParams(
            dimension_semantics=("parallel", "arbitrary"),
            vmem_limit_bytes=_VMEM_LIMIT),
    )(x2d, g.reshape(1, D), bln.reshape(1, D), wq, wk, wv,
      bq.reshape(1, D), bk.reshape(1, D), bv.reshape(1, D))


# ----------------------------------------------------------------------------
# Flash-style attention + fused output projection (w_o) + residual add.
# Causal + padding mask generated in-kernel; k-tiles fully above the diagonal
# are skipped (no MXU / exp work).  Heads stay packed along lanes ([*, S, D]).
# ----------------------------------------------------------------------------
def _attn_kernel(mask_ref, q_ref, k_ref, v_ref, wo_ref, bo_ref, res_ref, o_ref,
                 acc_ref, m_ref, l_ref, *, num_heads, head_dim):
    qi = pl.program_id(1)
    ki = pl.program_id(2)
    tq = q_ref.shape[1]
    tk = k_ref.shape[1]

    @pl.when(ki == 0)
    def _():
        acc_ref[...] = jnp.zeros_like(acc_ref)
        m_ref[...] = jnp.full_like(m_ref, -1e30)
        l_ref[...] = jnp.zeros_like(l_ref)

    q_last = qi * tq + tq - 1
    k_first = ki * tk

    # Causal tile skip: fully-above-diagonal k-tiles contribute nothing.
    @pl.when(k_first <= q_last)
    def _():
        q_pos = qi * tq + jax.lax.broadcasted_iota(jnp.int32, (tq, tk), 0)
        k_pos = k_first + jax.lax.broadcasted_iota(jnp.int32, (tq, tk), 1)
        key_ok = mask_ref[0] > 0.0                          # (1, tk)
        allowed = jnp.logical_and(q_pos >= k_pos, key_ok)   # (tq, tk)

        for h in range(num_heads):
            sl = slice(h * head_dim, (h + 1) * head_dim)
            q_h = q_ref[0, :, sl]                            # (tq, Dh) bf16, pre-scaled
            k_h = k_ref[0, :, sl]
            v_h = v_ref[0, :, sl]
            s = jax.lax.dot_general(q_h, k_h, (((1,), (1,)), ((), ())),
                                    preferred_element_type=jnp.float32)  # (tq, tk)
            s = jnp.where(allowed, s, -1e30)
            m_prev = m_ref[h]                                # (tq, 1)
            m_new = jnp.maximum(m_prev, jnp.max(s, axis=-1, keepdims=True))
            alpha = jnp.exp(m_prev - m_new)
            p = jnp.exp(s - m_new)
            l_ref[h] = alpha * l_ref[h] + jnp.sum(p, axis=-1, keepdims=True)
            acc_ref[:, sl] = alpha * acc_ref[:, sl] + jnp.dot(
                p.astype(v_h.dtype), v_h, preferred_element_type=jnp.float32)
            m_ref[h] = m_new

    @pl.when(ki == pl.num_programs(2) - 1)
    def _():
        # Fused: normalize, project through w_o (K-split per head -> no lane
        # concat needed), add bias + residual, single lane-dense (tq, D) store.
        out = res_ref[0].astype(jnp.float32) + bo_ref[...]   # (tq, D)
        for h in range(num_heads):
            sl = slice(h * head_dim, (h + 1) * head_dim)
            inv_l = pl.reciprocal(l_ref[h], approx=True)      # (tq, 1), EUP slot
            nh = (acc_ref[:, sl] * inv_l).astype(wo_ref.dtype)
            out = out + jnp.dot(nh, wo_ref[sl, :], preferred_element_type=jnp.float32)
        o_ref[0] = out.astype(o_ref.dtype)


def attention_out_proj(q, k, v, mask3d, w_o, b_o, res3d, *, num_heads):
    B, S, D = q.shape
    head_dim = D // num_heads
    tq = _tile(S, 256)
    tk = _tile(S, 256)   # tq == tk: diagonal-aligned tiles, smaller live f32 temporaries
    grid = (B, S // tq, S // tk)
    return pl.pallas_call(
        functools.partial(_attn_kernel, num_heads=num_heads, head_dim=head_dim),
        grid=grid,
        in_specs=[
            pl.BlockSpec((1, 1, tk), lambda b, qi, ki: (b, 0, ki)),
            pl.BlockSpec((1, tq, D), lambda b, qi, ki: (b, qi, 0)),
            pl.BlockSpec((1, tk, D), lambda b, qi, ki: (b, ki, 0)),
            pl.BlockSpec((1, tk, D), lambda b, qi, ki: (b, ki, 0)),
            pl.BlockSpec((D, D), lambda b, qi, ki: (0, 0)),
            pl.BlockSpec((1, D), lambda b, qi, ki: (0, 0)),
            pl.BlockSpec((1, tq, D), lambda b, qi, ki: (b, qi, 0)),
        ],
        out_specs=pl.BlockSpec((1, tq, D), lambda b, qi, ki: (b, qi, 0)),
        out_shape=jax.ShapeDtypeStruct((B, S, D), jnp.float32),
        scratch_shapes=[
            pltpu.VMEM((tq, D), jnp.float32),
            pltpu.VMEM((num_heads, tq, 1), jnp.float32),
            pltpu.VMEM((num_heads, tq, 1), jnp.float32),
        ],
        compiler_params=pltpu.CompilerParams(
            dimension_semantics=("parallel", "parallel", "arbitrary"),
            vmem_limit_bytes=_VMEM_LIMIT),
    )(mask3d, q, k, v, w_o, b_o.reshape(1, D), res3d)


# ----------------------------------------------------------------------------
# Fused MLP block: LN2 -> fc -> GELU -> proj -> residual add
# (4D intermediate tiled over grid axis 1; never materialized in HBM)
# ----------------------------------------------------------------------------
def _ln_mlp_kernel(x_ref, g_ref, bln_ref, wfc_ref, bfc_ref, wpr_ref, bpr_ref,
                   o_ref, hln_ref, acc_ref, *, eps):
    j = pl.program_id(1)

    @pl.when(j == 0)
    def _():
        x = x_ref[...].astype(jnp.float32)
        mu = jnp.mean(x, axis=-1, keepdims=True)
        var = jnp.mean(jnp.square(x - mu), axis=-1, keepdims=True)
        ln = (x - mu) * jax.lax.rsqrt(var + eps) * g_ref[...] + bln_ref[...]
        hln_ref[...] = ln.astype(hln_ref.dtype)
        acc_ref[...] = jnp.zeros_like(acc_ref)

    z = jnp.dot(hln_ref[...], wfc_ref[...], preferred_element_type=jnp.float32) + bfc_ref[...]
    # TODO(synk): tanh-approx GELU (GPT-2 style); exact erf GELU would differ slightly.
    z = jax.nn.gelu(z, approximate=True)
    acc_ref[...] += jnp.dot(z.astype(wpr_ref.dtype), wpr_ref[...],
                            preferred_element_type=jnp.float32)

    @pl.when(j == pl.num_programs(1) - 1)
    def _():
        # Residual kept f32 for parity with the f32 PyTorch reference.
        # (bf16 output here would halve HBM write traffic on v5e.)
        o_ref[...] = (x_ref[...].astype(jnp.float32) + acc_ref[...]
                      + bpr_ref[...]).astype(o_ref.dtype)


def ln_mlp(x2d, g, bln, w_fc, b_fc, w_pr, b_pr, eps=1e-5):
    M, D = x2d.shape
    HID = w_fc.shape[1]
    tm, th = _tile(M, 512), _tile(HID, 512)
    grid = (M // tm, HID // th)
    return pl.pallas_call(
        functools.partial(_ln_mlp_kernel, eps=eps),
        grid=grid,
        in_specs=[
            pl.BlockSpec((tm, D), lambda i, j: (i, 0)),
            pl.BlockSpec((1, D), lambda i, j: (0, 0)),
            pl.BlockSpec((1, D), lambda i, j: (0, 0)),
            pl.BlockSpec((D, th), lambda i, j: (0, j)),
            pl.BlockSpec((1, th), lambda i, j: (0, j)),
            pl.BlockSpec((th, D), lambda i, j: (j, 0)),
            pl.BlockSpec((1, D), lambda i, j: (0, 0)),
        ],
        out_specs=pl.BlockSpec((tm, D), lambda i, j: (i, 0)),
        out_shape=jax.ShapeDtypeStruct((M, D), jnp.float32),
        scratch_shapes=[pltpu.VMEM((tm, D), jnp.bfloat16),
                        pltpu.VMEM((tm, D), jnp.float32)],
        compiler_params=pltpu.CompilerParams(
            dimension_semantics=("parallel", "arbitrary"),
            vmem_limit_bytes=_VMEM_LIMIT),
    )(x2d, g.reshape(1, D), bln.reshape(1, D),
      w_fc, b_fc.reshape(1, HID), w_pr, b_pr.reshape(1, D))


# ----------------------------------------------------------------------------
# Fused final LN + value head on the [B, D] last-token rows only
# ----------------------------------------------------------------------------
def _ln_value_head_kernel(x_ref, g_ref, bln_ref, w1_ref, b1_ref, w2_ref, b2_ref,
                          o_ref, *, eps):
    x = x_ref[...].astype(jnp.float32)
    mu = jnp.mean(x, axis=-1, keepdims=True)
    var = jnp.mean(jnp.square(x - mu), axis=-1, keepdims=True)
    ln = (x - mu) * jax.lax.rsqrt(var + eps) * g_ref[...] + bln_ref[...]
    z = jnp.dot(ln.astype(w1_ref.dtype), w1_ref[...],
                preferred_element_type=jnp.float32) + b1_ref[...]
    z = jnp.maximum(z, 0.0)
    # TODO(synk): nn.Dropout(p) treated as identity (inference/eval mode).
    # w2 applied as a lane reduction (avoids degenerate N=1 MXU op / 1-lane store path).
    r = jnp.sum(z * w2_ref[...], axis=-1, keepdims=True) + b2_ref[...]
    o_ref[...] = r.astype(o_ref.dtype)


def ln_value_head(last_h, g, bln, w1, b1, w2_row, b2, eps=1e-5):
    B, D = last_h.shape
    # Tiny [B, D] op: whole-array VMEM residency is fine here.
    return pl.pallas_call(
        functools.partial(_ln_value_head_kernel, eps=eps),
        out_shape=jax.ShapeDtypeStruct((B, 1), jnp.float32),
        in_specs=[_VMEM_FULL] * 7,
        out_specs=_VMEM_FULL,
    )(last_h, g.reshape(1, D), bln.reshape(1, D), w1, b1.reshape(1, D), w2_row, b2)


# ----------------------------------------------------------------------------
# Parameters (deterministic synthetic init; matmul weights in bf16).
# 1/sqrt(head_dim) is folded into w_q / b_q here, once, so the attention
# kernel never multiplies by the scale.
# ----------------------------------------------------------------------------
def init_params(key, vocab, max_pos, dim, n_layers):
    keys = iter(jax.random.split(key, 8 * n_layers + 8))

    def rnd_f32(shape):
        return 0.02 * jax.random.normal(next(keys), shape, jnp.float32)

    def rnd(shape, dtype=jnp.float32):
        return rnd_f32(shape).astype(dtype)

    wdt = jnp.bfloat16
    q_scale = 1.0 / math.sqrt(dim // NUM_HEADS)

    params = {
        "wte": rnd((vocab, dim)),
        "wpe": rnd((max_pos, dim)),
        "ln_f_g": jnp.ones((dim,), jnp.float32),
        "ln_f_b": jnp.zeros((dim,), jnp.float32),
        "vh_w1": rnd((dim, dim), wdt),
        "vh_b1": jnp.zeros((dim,), jnp.float32),
        "vh_w2": rnd((1, dim)),                      # second linear stored as a row (f32)
        "vh_b2": jnp.zeros((1, 1), jnp.float32),
        "layers": [],
    }
    for _ in range(n_layers):
        params["layers"].append({
            "ln1_g": jnp.ones((dim,), jnp.float32), "ln1_b": jnp.zeros((dim,), jnp.float32),
            # q_scale folded into the Q projection (one-time weight transform)
            "w_q": (rnd_f32((dim, dim)) * q_scale).astype(wdt),
            "b_q": jnp.zeros((dim,), jnp.float32) * q_scale,
            "w_k": rnd((dim, dim), wdt), "b_k": jnp.zeros((dim,), jnp.float32),
            "w_v": rnd((dim, dim), wdt), "b_v": jnp.zeros((dim,), jnp.float32),
            "w_o": rnd((dim, dim), wdt), "b_o": jnp.zeros((dim,), jnp.float32),
            "ln2_g": jnp.ones((dim,), jnp.float32), "ln2_b": jnp.zeros((dim,), jnp.float32),
            "w_fc": rnd((dim, 4 * dim), wdt), "b_fc": jnp.zeros((4 * dim,), jnp.float32),
            "w_pr": rnd((4 * dim, dim), wdt), "b_pr": jnp.zeros((dim,), jnp.float32),
        })
    return params


# ----------------------------------------------------------------------------
# Forward pass: GPT-2 backbone (frozen) -> last-token hidden -> value head
# ----------------------------------------------------------------------------
def reward_model_forward(params, input_ids, attention_mask=None, position_ids=None):
    B, S = input_ids.shape
    D = params["wte"].shape[1]
    H = NUM_HEADS

    if position_ids is None:
        position_ids = jnp.broadcast_to(jnp.arange(S), (B, S))
    if attention_mask is None:
        attention_mask = jnp.ones((B, S), jnp.float32)

    # embedding gather (glue, plain JAX); residual stream kept in f32
    x2d = (params["wte"][input_ids] + params["wpe"][position_ids]).reshape(B * S, D)
    mask3d = attention_mask.astype(jnp.float32).reshape(B, 1, S)

    for lp in params["layers"]:
        # --- attention block: LN1+QKV fused; flash attn + w_o proj + residual fused ---
        q, k, v = ln_qkv(x2d, lp["ln1_g"], lp["ln1_b"],
                         lp["w_q"], lp["w_k"], lp["w_v"],
                         lp["b_q"], lp["b_k"], lp["b_v"])
        x3 = attention_out_proj(q.reshape(B, S, D), k.reshape(B, S, D), v.reshape(B, S, D),
                                mask3d, lp["w_o"], lp["b_o"],
                                x2d.reshape(B, S, D), num_heads=H)   # [B, S, D] f32
        x2d = x3.reshape(B * S, D)

        # --- MLP block: LN2 -> fc -> GELU -> proj -> residual, fully fused ---
        x2d = ln_mlp(x2d, lp["ln2_g"], lp["ln2_b"],
                     lp["w_fc"], lp["b_fc"], lp["w_pr"], lp["b_pr"])

    # last-token gather BEFORE final LN (LN is per-row, so identical result,
    # and we only normalize the B rows that are actually used).
    # TODO(synk): matches reference hidden_states[:, -1, :] (absolute last position).
    last_hidden = x2d.reshape(B, S, D)[:, -1, :]                     # [B, D]
    rewards = ln_value_head(last_hidden, params["ln_f_g"], params["ln_f_b"],
                            params["vh_w1"], params["vh_b1"],
                            params["vh_w2"], params["vh_b2"])        # [B, 1]
    return rewards.reshape(B)


# ----------------------------------------------------------------------------
if __name__ == "__main__":
    B, S, D, L, V = 2, 8, 32, 2, 64

    key = jax.random.PRNGKey(0)
    k_params, k_ids = jax.random.split(key)
    params = init_params(k_params, vocab=V, max_pos=S, dim=D, n_layers=L)

    input_ids = jax.random.randint(k_ids, (B, S), 0, V, dtype=jnp.int32)
    attention_mask = jnp.ones((B, S), jnp.float32)

    rewards = reward_model_forward(params, input_ids, attention_mask)
    rewards = jax.block_until_ready(rewards)

    assert rewards.shape == (B,), rewards.shape
    assert jnp.all(jnp.isfinite(rewards))
    print("KERNEL_OK")
</pallas_src>

<mosaic_0001>
module attributes {stable_mosaic.version = 11 : i64} {
  func.func @_ln_qkv_kernel(%arg0: i32, %arg1: i32, %arg2: memref<16x32xf32, #tpu.memory_space<vmem>>, %arg3: memref<1x32xf32, #tpu.memory_space<vmem>>, %arg4: memref<1x32xf32, #tpu.memory_space<vmem>>, %arg5: memref<32x32xbf16, #tpu.memory_space<vmem>>, %arg6: memref<32x32xbf16, #tpu.memory_space<vmem>>, %arg7: memref<32x32xbf16, #tpu.memory_space<vmem>>, %arg8: memref<1x32xf32, #tpu.memory_space<vmem>>, %arg9: memref<1x32xf32, #tpu.memory_space<vmem>>, %arg10: memref<1x32xf32, #tpu.memory_space<vmem>>, %arg11: memref<16x32xbf16, #tpu.memory_space<vmem>>, %arg12: memref<16x32xbf16, #tpu.memory_space<vmem>>, %arg13: memref<16x32xbf16, #tpu.memory_space<vmem>>, %arg14: memref<16x32xbf16, #tpu.memory_space<vmem>>) attributes {dimension_semantics = [#tpu.dimension_semantics<parallel>, #tpu.dimension_semantics<arbitrary>], iteration_bounds = array<i64: 1, 1>, scalar_prefetch = 0 : i64, scratch_operands = 1 : i64, tpu.core_type = #tpu.core_type<tc>, window_params = [{transform_indices = @transform_0, window_bounds = array<i64: 16, 32>}, {pipeline_mode = #tpu.pipeline_mode<synchronous>, transform_indices = @transform_1, window_bounds = array<i64: 1, 32>}, {pipeline_mode = #tpu.pipeline_mode<synchronous>, transform_indices = @transform_2, window_bounds = array<i64: 1, 32>}, {transform_indices = @transform_3, window_bounds = array<i64: 32, 32>}, {transform_indices = @transform_4, window_bounds = array<i64: 32, 32>}, {transform_indices = @transform_5, window_bounds = array<i64: 32, 32>}, {transform_indices = @transform_6, window_bounds = array<i64: 1, 32>}, {transform_indices = @transform_7, window_bounds = array<i64: 1, 32>}, {transform_indices = @transform_8, window_bounds = array<i64: 1, 32>}, {transform_indices = @transform_9, window_bounds = array<i64: 16, 32>}, {transform_indices = @transform_10, window_bounds = array<i64: 16, 32>}, {transform_indices = @transform_11, window_bounds = array<i64: 16, 32>}]} {
    %c0_i32 = arith.constant 0 : i32
    %0 = arith.cmpi eq, %arg1, %c0_i32 : i32
    %1 = arith.extui %0 : i1 to i32
    %c0_i32_0 = arith.constant 0 : i32
    %2 = arith.cmpi ne, %1, %c0_i32_0 : i32
    scf.if %2 {
      %c0_22 = arith.constant 0 : index
      %c0_23 = arith.constant 0 : index
      %25 = vector.load %arg2[%c0_22, %c0_23] : memref<16x32xf32, #tpu.memory_space<vmem>>, vector<16x32xf32>
      %cst_24 = arith.constant dense<0.000000e+00> : vector<16xf32>
      %26 = vector.multi_reduction <add>, %25, %cst_24 [1] : vector<16x32xf32> to vector<16xf32>
      %27 = vector.shape_cast %26 : vector<16xf32> to vector<16x1xf32>
      %cst_25 = arith.constant 3.200000e+01 : f32
      %28 = vector.broadcast %cst_25 : f32 to vector<16x1xf32>
      %29 = arith.divf %27, %28 : vector<16x1xf32>
      %30 = vector.broadcast %29 : vector<16x1xf32> to vector<16x32xf32>
      %31 = arith.subf %25, %30 : vector<16x32xf32>
      %32 = arith.mulf %31, %31 : vector<16x32xf32>
      %cst_26 = arith.constant dense<0.000000e+00> : vector<16xf32>
      %33 = vector.multi_reduction <add>, %32, %cst_26 [1] : vector<16x32xf32> to vector<16xf32>
      %34 = vector.shape_cast %33 : vector<16xf32> to vector<16x1xf32>
      %cst_27 = arith.constant 3.200000e+01 : f32
      %35 = vector.broadcast %cst_27 : f32 to vector<16x1xf32>
      %36 = arith.divf %34, %35 : vector<16x1xf32>
      %37 = vector.broadcast %29 : vector<16x1xf32> to vector<16x32xf32>
      %38 = arith.subf %25, %37 : vector<16x32xf32>
      %cst_28 = arith.constant 9.99999974E-6 : f32
      %39 = vector.broadcast %cst_28 : f32 to vector<16x1xf32>
      %40 = arith.addf %36, %39 : vector<16x1xf32>
      %41 = math.rsqrt %40 : vector<16x1xf32>
      %42 = vector.broadcast %41 : vector<16x1xf32> to vector<16x32xf32>
      %43 = arith.mulf %38, %42 : vector<16x32xf32>
      %c0_29 = arith.constant 0 : index
      %c0_30 = arith.constant 0 : index
      %44 = vector.load %arg3[%c0_29, %c0_30] : memref<1x32xf32, #tpu.memory_space<vmem>>, vector<1x32xf32>
      %45 = vector.broadcast %44 : vector<1x32xf32> to vector<16x32xf32>
      %46 = arith.mulf %43, %45 : vector<16x32xf32>
      %c0_31 = arith.constant 0 : index
      %c0_32 = arith.constant 0 : index
      %47 = vector.load %arg4[%c0_31, %c0_32] : memref<1x32xf32, #tpu.memory_space<vmem>>, vector<1x32xf32>
      %48 = vector.broadcast %47 : vector<1x32xf32> to vector<16x32xf32>
      %49 = arith.addf %46, %48 : vector<16x32xf32>
      %50 = arith.truncf %49 : vector<16x32xf32> to vector<16x32xbf16>
      %c0_33 = arith.constant 0 : index
      %c0_34 = arith.constant 0 : index
      %51 = vector.load %arg14[%c0_33, %c0_34] : memref<16x32xbf16, #tpu.memory_space<vmem>>, vector<16x32xbf16>
      tpu.vector_store %arg14[%c0_33, %c0_34], %50 {strides = array<i32>} : memref<16x32xbf16, #tpu.memory_space<vmem>>, vector<16x32xbf16>,
    } else {
    }
    %c0 = arith.constant 0 : index
    %c0_1 = arith.constant 0 : index
    %3 = vector.load %arg14[%c0, %c0_1] : memref<16x32xbf16, #tpu.memory_space<vmem>>, vector<16x32xbf16>
    %c0_2 = arith.constant 0 : index
    %c0_3 = arith.constant 0 : index
    %4 = vector.load %arg5[%c0_2, %c0_3] : memref<32x32xbf16, #tpu.memory_space<vmem>>, vector<32x32xbf16>
    %cst = arith.constant dense<0.000000e+00> : vector<16x32xf32>
    %5 = tpu.matmul %3, %4, %cst {dimension_numbers = #tpu.dot_dimension_numbers<[1], [0], [0], [1], [0, 0, 1, 1], [], []>} : vector<16x32xbf16>, vector<32x32xbf16>, vector<16x32xf32> -> vector<16x32xf32>
    %c0_4 = arith.constant 0 : index
    %c0_5 = arith.constant 0 : index
    %6 = vector.load %arg8[%c0_4, %c0_5] : memref<1x32xf32, #tpu.memory_space<vmem>>, vector<1x32xf32>
    %7 = vector.broadcast %6 : vector<1x32xf32> to vector<16x32xf32>
    %8 = arith.addf %5, %7 : vector<16x32xf32>
    %9 = arith.truncf %8 : vector<16x32xf32> to vector<16x32xbf16>
    %c0_6 = arith.constant 0 : index
    %c0_7 = arith.constant 0 : index
    %10 = vector.load %arg11[%c0_6, %c0_7] : memref<16x32xbf16, #tpu.memory_space<vmem>>, vector<16x32xbf16>
    tpu.vector_store %arg11[%c0_6, %c0_7], %9 {strides = array<i32>} : memref<16x32xbf16, #tpu.memory_space<vmem>>, vector<16x32xbf16>,
    %c0_8 = arith.constant 0 : index
    %c0_9 = arith.constant 0 : index
    %11 = vector.load %arg6[%c0_8, %c0_9] : memref<32x32xbf16, #tpu.memory_space<vmem>>, vector<32x32xbf16>
    %cst_10 = arith.constant dense<0.000000e+00> : vector<16x32xf32>
    %12 = tpu.matmul %3, %11, %cst_10 {dimension_numbers = #tpu.dot_dimension_numbers<[1], [0], [0], [1], [0, 0, 1, 1], [], []>} : vector<16x32xbf16>, vector<32x32xbf16>, vector<16x32xf32> -> vector<16x32xf32>
    %c0_11 = arith.constant 0 : index
    %c0_12 = arith.constant 0 : index
    %13 = vector.load %arg9[%c0_11, %c0_12] : memref<1x32xf32, #tpu.memory_space<vmem>>, vector<1x32xf32>
    %14 = vector.broadcast %13 : vector<1x32xf32> to vector<16x32xf32>
    %15 = arith.addf %12, %14 : vector<16x32xf32>
    %16 = arith.truncf %15 : vector<16x32xf32> to vector<16x32xbf16>
    %c0_13 = arith.constant 0 : index
    %c0_14 = arith.constant 0 : index
    %17 = vector.load %arg12[%c0_13, %c0_14] : memref<16x32xbf16, #tpu.memory_space<vmem>>, vector<16x32xbf16>
    tpu.vector_store %arg12[%c0_13, %c0_14], %16 {strides = array<i32>} : memref<16x32xbf16, #tpu.memory_space<vmem>>, vector<16x32xbf16>,
    %c0_15 = arith.constant 0 : index
    %c0_16 = arith.constant 0 : index
    %18 = vector.load %arg7[%c0_15, %c0_16] : memref<32x32xbf16, #tpu.memory_space<vmem>>, vector<32x32xbf16>
    %cst_17 = arith.constant dense<0.000000e+00> : vector<16x32xf32>
    %19 = tpu.matmul %3, %18, %cst_17 {dimension_numbers = #tpu.dot_dimension_numbers<[1], [0], [0], [1], [0, 0, 1, 1], [], []>} : vector<16x32xbf16>, vector<32x32xbf16>, vector<16x32xf32> -> vector<16x32xf32>
    %c0_18 = arith.constant 0 : index
    %c0_19 = arith.constant 0 : index
    %20 = vector.load %arg10[%c0_18, %c0_19] : memref<1x32xf32, #tpu.memory_space<vmem>>, vector<1x32xf32>
    %21 = vector.broadcast %20 : vector<1x32xf32> to vector<16x32xf32>
    %22 = arith.addf %19, %21 : vector<16x32xf32>
    %23 = arith.truncf %22 : vector<16x32xf32> to vector<16x32xbf16>
    %c0_20 = arith.constant 0 : index
    %c0_21 = arith.constant 0 : index
    %24 = vector.load %arg13[%c0_20, %c0_21] : memref<16x32xbf16, #tpu.memory_space<vmem>>, vector<16x32xbf16>
    tpu.vector_store %arg13[%c0_20, %c0_21], %23 {strides = array<i32>} : memref<16x32xbf16, #tpu.memory_space<vmem>>, vector<16x32xbf16>,
    return
  }
  func.func @transform_0(%arg0: i32, %arg1: i32) -> (i32, i32) {
    %c0_i32 = arith.constant 0 : i32
    %c0_i32_0 = arith.constant 0 : i32
    return %arg0, %c0_i32 : i32, i32
  }
  func.func @transform_1(%arg0: i32, %arg1: i32) -> (i32, i32) {
    %c0_i32 = arith.constant 0 : i32
    %c0_i32_0 = arith.constant 0 : i32
    %c0_i32_1 = arith.constant 0 : i32
    return %c0_i32, %c0_i32_0 : i32, i32
  }
  func.func @transform_2(%arg0: i32, %arg1: i32) -> (i32, i32) {
    %c0_i32 = arith.constant 0 : i32
    %c0_i32_0 = arith.constant 0 : i32
    %c0_i32_1 = arith.constant 0 : i32
    return %c0_i32, %c0_i32_0 : i32, i32
  }
  func.func @transform_3(%arg0: i32, %arg1: i32) -> (i32, i32) {
    %c0_i32 = arith.constant 0 : i32
    %c0_i32_0 = arith.constant 0 : i32
    return %c0_i32, %arg1 : i32, i32
  }
  func.func @transform_4(%arg0: i32, %arg1: i32) -> (i32, i32) {
    %c0_i32 = arith.constant 0 : i32
    %c0_i32_0 = arith.constant 0 : i32
    return %c0_i32, %arg1 : i32, i32
  }
  func.func @transform_5(%arg0: i32, %arg1: i32) -> (i32, i32) {
    %c0_i32 = arith.constant 0 : i32
    %c0_i32_0 = arith.constant 0 : i32
    return %c0_i32, %arg1 : i32, i32
  }
  func.func @transform_6(%arg0: i32, %arg1: i32) -> (i32, i32) {
    %c0_i32 = arith.constant 0 : i32
    %c0_i32_0 = arith.constant 0 : i32
    return %c0_i32, %arg1 : i32, i32
  }
  func.func @transform_7(%arg0: i32, %arg1: i32) -> (i32, i32) {
    %c0_i32 = arith.constant 0 : i32
    %c0_i32_0 = arith.constant 0 : i32
    return %c0_i32, %arg1 : i32, i32
  }
  func.func @transform_8(%arg0: i32, %arg1: i32) -> (i32, i32) {
    %c0_i32 = arith.constant 0 : i32
    %c0_i32_0 = arith.constant 0 : i32
    return %c0_i32, %arg1 : i32, i32
  }
  func.func @transform_9(%arg0: i32, %arg1: i32) -> (i32, i32) {
    %c0_i32 = arith.constant 0 : i32
    return %arg0, %arg1 : i32, i32
  }
  func.func @transform_10(%arg0: i32, %arg1: i32) -> (i32, i32) {
    %c0_i32 = arith.constant 0 : i32
    return %arg0, %arg1 : i32, i32
  }
  func.func @transform_11(%arg0: i32, %arg1: i32) -> (i32, i32) {
    %c0_i32 = arith.constant 0 : i32
    return %arg0, %arg1 : i32, i32
  }
}

</mosaic_0001>

<bundles_post_ra>
// kernel: tpu_custom_call.1
= control target key start
LH: loop header
LB: loop body
LE: loop exit
PB: predicated region body
PF: predicated region fallthrough
CT: control target
= control target key end

     0   :  { %17 = vsyncpa [#allocation4], 0  ;;  %s835_s0 = inlined_call_operand.hbm [shape: f32[16,32], index: 0, kind: input, shape index: {}]   ;;  %s836_s1 = inlined_call_operand.vmem [shape: f32[1,32], index: 1, kind: input, shape index: {}]   ;;  %s837_s2 = inlined_call_operand.vmem [shape: f32[1,32], index: 2, kind: input, shape index: {}]   ;;  %s838_s3 = inlined_call_operand.hbm [shape: bf16[32,32], index: 3, kind: input, shape index: {}]   ;;  %s839_s4 = inlined_call_operand.hbm [shape: bf16[32,32], index: 4, kind: input, shape index: {}]   ;;  %s840_s5 = inlined_call_operand.vmem [shape: bf16[32,32], index: 5, kind: input, shape index: {}]   ;;  %s841_s6 = inlined_call_operand.vmem [shape: f32[1,32], index: 6, kind: input, shape index: {}]   ;;  %s842_s7 = inlined_call_operand.vmem [shape: f32[1,32], index: 7, kind: input, shape index: {}]   ;;  %s843_s8 = inlined_call_operand.vmem [shape: f32[1,32], index: 8, kind: input, shape index: {}]   ;;  %s844_s9 = inlined_call_operand.hbm [shape: bf16[16,32], index: 9, kind: output, shape index: {0}]   ;;  %s845_s10 = inlined_call_operand.hbm [shape: bf16[16,32], index: 10, kind: output, shape index: {1}]   ;;  %s846_s11 = inlined_call_operand.hbm [shape: bf16[16,32], index: 11, kind: output, shape index: {2}]  }
   0x1   :  { %18 = vsyncpa [#allocation7], 0 }
   0x2   :  { %19 = vsyncpa [#allocation5], 0 }
   0x3   :  { %20 = vsyncpa [#allocation11], 0  ;;  %s631_s17 = smov [#allocation6]   ;;  %s491_s21 = scalar_lea.hbm %s838_s3, 256 }
   0x4   :  { %s42_s18 = sshll.u32 %s631_s17, 4  ;;  %p492_p0 = scmp.ne.s32.totalorder %s838_s3, %s491_s21  ;;  %s43_s18 = int_to_ptr.vmem [resolvable:$true] %s42_s18 }
   0x5   :  { %p495_p1 = scmp.lt.u32.totalorder %s491_s21, %s838_s3 }
   0x7   :  { %p497_p2 = pnand %p495_p1, %p492_p0 }
   0x9   :  { %500 = shalt.err (!%p497_p2)
}
   0xa   :  { %s501_s26 = scalar_lea.vmem %s43_s18, 256  ;;  %p506_p4 = scmp.lt.s32.totalorder %s43_s18, %s43_s18 }
   0xb   :  { %p502_p3 = scmp.ne.s32.totalorder %s43_s18, %s501_s26  ;;  %p507_p5 = scmp.lt.s32.totalorder %s501_s26, %s501_s26 }
   0xd   :  { %p508_p6 = por %p507_p5, %p506_p4 }
   0xf   :  { %p509_p7 = pnand %p508_p6, %p502_p3 }
  0x11   :  { %512 = shalt.err (!%p509_p7)
}
  0x12   :  { %s632_s27 = smov 64   ;;  %s633_s28 = smov 4  }
  0x13   :  { %48 = dma.hbm_to_vmem [thread:$0]  %s838_s3, 256, %s43_s18, [#allocation7], %s632_s27, %s632_s27, %s633_s28  }
  0x14   :  { %s634_s12 = smov [#allocation3]   ;;  %s513_s16 = scalar_lea.hbm %s835_s0, 256 }
  0x15   :  { %s26_s13 = sshll.u32 %s634_s12, 4  ;;  %p514_p8 = scmp.ne.s32.totalorder %s835_s0, %s513_s16  ;;  %s27_s13 = int_to_ptr.vmem [resolvable:$true] %s26_s13 }
  0x16   :  { %p517_p9 = scmp.lt.u32.totalorder %s513_s16, %s835_s0 }
  0x18   :  { %p519_p10 = pnand %p517_p9, %p514_p8 }
  0x1a   :  { %522 = shalt.err (!%p519_p10)
}
  0x1b   :  { %s523_s22 = scalar_lea.vmem %s27_s13, 256  ;;  %p528_p12 = scmp.lt.s32.totalorder %s27_s13, %s27_s13 }
  0x1c   :  { %p524_p11 = scmp.ne.s32.totalorder %s27_s13, %s523_s22  ;;  %p529_p13 = scmp.lt.s32.totalorder %s523_s22, %s523_s22 }
  0x1e   :  { %p530_p0 = por %p529_p13, %p528_p12 }
  0x20   :  { %p531_p1 = pnand %p530_p0, %p524_p11 }
  0x22   :  { %534 = shalt.err (!%p531_p1)
}
  0x23   :  { %s635_s3 = smov 128   ;;  %s636_s18 = smov 8  }
  0x24   :  { %32 = dma.hbm_to_vmem [thread:$0]  %s835_s0, 256, %s27_s13, [#allocation4], %s635_s3, %s635_s3, %s636_s18  }
  0x25   :  { %s637_s25 = smov [#allocation8]   ;;  %s535_s12 = scalar_lea.hbm %s839_s4, 256 }
  0x26   :  { %s54_s26 = sshll.u32 %s637_s25, 4  ;;  %p536_p2 = scmp.ne.s32.totalorder %s839_s4, %s535_s12  ;;  %s55_s26 = int_to_ptr.vmem [resolvable:$true] %s54_s26 }
  0x27   :  { %p539_p3 = scmp.lt.u32.totalorder %s535_s12, %s839_s4 }
  0x29   :  { %p541_p4 = pnand %p539_p3, %p536_p2 }
  0x2b   :  { %544 = shalt.err (!%p541_p4)
}
  0x2c   :  { %s545_s19 = scalar_lea.vmem %s55_s26, 256  ;;  %p550_p6 = scmp.lt.s32.totalorder %s55_s26, %s55_s26 }
  0x2d   :  { %p546_p5 = scmp.ne.s32.totalorder %s55_s26, %s545_s19  ;;  %p551_p7 = scmp.lt.s32.totalorder %s545_s19, %s545_s19 }
  0x2f   :  { %p552_p8 = por %p551_p7, %p550_p6 }
  0x31   :  { %p553_p9 = pnand %p552_p8, %p546_p5 }
  0x33   :  { %556 = shalt.err (!%p553_p9)
}
  0x34   :  { %60 = dma.hbm_to_vmem [thread:$0]  %s839_s4, 256, %s55_s26, [#allocation7], %s632_s27, %s632_s27, %s633_s28  }
  0x35   :  { %623 = dma.done.wait [#allocation4], 256  }
  0x36   :  { %624 = vsyncadd [#allocation4], 4294967040 }
  0x37   :  { %625 = dma.done.wait [#allocation7], 512  }
  0x38   :  { %626 = vsyncadd [#allocation7], 4294966784  ;;  %vm85_vm0 = vcmask 261120   ;;  %v83_v0 = vld [vmem:[#allocation3] sm:$0xff]  ;;  %v84_v1 = vld [vmem:[#allocation3 + $0x8] sm:$0xff]  ;;  %v638_v16 = vmov 0.0  }
  0x39   :  { %v86_v2 = vsel %vm85_vm0, %v83_v0, 0.0  ;;  %v89_v3 = vsel %vm85_vm0, %v84_v1, 0.0  ;;  %v481_v14 = vld [vmem:[#allocation6] sm:$0xff]   ;;  %v482_v15 = vld [vmem:[#allocation8] sm:$0xff]   ;;  %445 = vmatprep.subr.bf16.mxu0 %v638_v16  ;;  %453 = vmatprep.subr.bf16.mxu1 %v638_v16  ;;  %v483_v17 = vld [vmem:[#allocation6 + $0x8] sm:$0xff]   ;;  %vm639_vm1 = vmmov 0  }
  0x3a   :  { %87 = vadd.xlane.f32.xlu0 %v86_v2  ;;  %446 = vmatpush3.bf16.msra.mxu0 %v481_v14  ;;  %v484_v18 = vld [vmem:[#allocation8 + $0x8] sm:$0xff]   ;;  %v410_v27 = vld [vmem:[%s836_s1] ss:$0 sm:$0xff]  ;;  %v486_v38 = vld [vmem:[%s840_s5 + $0x8] sm:$0xff]   ;;  %vm210_vm2 = vcmask 257024  }
  0x3b   :  { %454 = vmatpush3.bf16.msra.mxu1 %v482_v15  ;;  %447 = vmatprep.subr.bf16.mxu0 %v638_v16  ;;  %v411_v31 = vld [vmem:[%s837_s2] ss:$0 sm:$0xff] }
  0x3c   :  { %455 = vmatprep.subr.bf16.mxu1 %v638_v16  ;;  %449 = vmatprep.mubr.msk.bf16.mxu0 %vm639_vm1, %v638_v16  ;;  %v485_v36 = vld [vmem:[%s840_s5] sm:$0xff]   ;;  %s640_s5 = smov [#allocation10]  }
  0x3d   :  { %457 = vmatprep.mubr.msk.bf16.mxu1 %vm639_vm1, %v638_v16  ;;  %v412_v39 = vld [vmem:[%s841_s6] ss:$0 sm:$0xff]  ;;  %s378_s29 = sshll.u32 %s640_s5, 4  ;;  %s641_s6 = smov [#allocation9]   ;;  %s379_s29 = int_to_ptr.vmem [resolvable:$true] %s378_s29 }
  0x3e   :  { %90 = vadd.xlane.f32.xlu0 %v89_v3  ;;  %448 = vmatpush3.bf16.msra.mxu0 %v483_v17  ;;  %v418_v40 = vld [vmem:[%s842_s7] ss:$0 sm:$0xff]  ;;  %s366_s30 = sshll.u32 %s641_s6, 4  ;;  %s557_s14 = scalar_lea.vmem %s379_s29, 128  ;;  %s779_s30 = int_to_ptr.vmem [resolvable:$true] %s366_s30 }
  0x3f   :  { %456 = vmatpush3.bf16.msra.mxu1 %v484_v18  ;;  %461 = vmatprep.subr.bf16.mxu0 %v638_v16  ;;  %v424_v57 = vld [vmem:[%s843_s8] ss:$0 sm:$0xff]  ;;  %p558_p10 = scmp.ne.s32.totalorder %s379_s29, %s557_s14  ;;  %p562_p11 = scmp.lt.s32.totalorder %s379_s29, %s379_s29 }
  0x40   :  { %p563_p12 = scmp.lt.s32.totalorder %s557_s14, %s557_s14 }
  0x42   :  { %p564_p13 = por %p563_p12, %p562_p11 }
  0x44   :  { %p565_p0 = pnand %p564_p13, %p558_p10 }
  0xc7   :  { %v88_v4 = vpop.xlane.xlu0 %87 }
  0xc8   :  { %v93_v5 = vmul.f32 0.03125, %v88_v4 }
  0xca   :  { %v95_v6 = vsub.f32 %v83_v0, %v93_v5 }
  0xcb   :  { %v91_v7 = vpop.xlane.xlu0 %90 }
  0xcc   :  { %v94_v8 = vmul.f32 0.03125, %v91_v7  ;;  %v97_v9 = vmul.f32 %v95_v6, %v95_v6 }
  0xce   :  { %v96_v10 = vsub.f32 %v84_v1, %v94_v8  ;;  %v99_v11 = vsel %vm85_vm0, %v97_v9, 0.0 }
  0xcf   :  { %100 = vadd.xlane.f32.xlu1 %v99_v11 }
  0xd0   :  { %v98_v12 = vmul.f32 %v96_v10, %v96_v10 }
  0xd2   :  { %v102_v13 = vsel %vm85_vm0, %v98_v12, 0.0 }
  0xd3   :  { %103 = vadd.xlane.f32.xlu1 %v102_v13 }
 0x15c   :  { %v101_v19 = vpop.xlane.xlu1 %100 }
 0x15d   :  { %v105_v20 = vmul.f32 0.03125, %v101_v19 }
 0x15f   :  { %v107_v21 = vadd.f32 1e-05, %v105_v20 }
 0x160   :  { %v104_v22 = vpop.xlane.xlu1 %103 }
 0x161   :  { %487 = vrsqrt.f32 %v107_v21  ;;  %v106_v23 = vmul.f32 0.03125, %v104_v22 }
 0x163   :  { %v108_v24 = vadd.f32 1e-05, %v106_v23 }
 0x165   :  { %489 = vrsqrt.f32 %v108_v24 }
 0x16b   :  { %v488_v25 = vpop.eup %487 }
 0x16c   :  { %v111_v26 = vmul.f32 %v488_v25, %v95_v6 }
 0x16e   :  { %v120_v29 = vmul.f32 %v410_v27, %v111_v26 }
 0x16f   :  { %v490_v28 = vpop.eup %489 }
 0x170   :  { %v112_v30 = vmul.f32 %v490_v28, %v96_v10  ;;  %v129_v33 = vadd.f32 %v411_v31, %v120_v29 }
 0x172   :  { %v121_v32 = vmul.f32 %v410_v27, %v112_v30 }
 0x174   :  { %v130_v34 = vadd.f32 %v411_v31, %v121_v32 }
 0x176   :  { %v131_v35 = vpack.c.bf16 %v130_v34, %v129_v33 }
 0x178   :  { %132 = vst.msk [vmem:[#allocation2] sm:$0xff] %vm85_vm0, %v131_v35 }
 0x17f   :  { %v133_v37 = vld [vmem:[#allocation2] sm:$0xff] }
 0x180   :  { %450 = vmatmul.mubr.msk.bf16.vlgmr.msra.gmra.mrb[0].mxu0 %vm85_vm0, %v133_v37  ;;  %458 = vmatmul.mubr.msk.bf16.vlgmr.msra.gmra.mrb[0].mxu1 %vm85_vm0, %v133_v37 }
 0x181   :  { %462 = vmatpush3.bf16.msra.mxu0 %v485_v36  ;;  %465 = vmatprep.mubr.msk.bf16.mxu0 %vm639_vm1, %v638_v16 }
 0x182   :  { %463 = vmatprep.subr.bf16.mxu0 %v638_v16 }
 0x185   :  { %464 = vmatpush3.bf16.msra.mxu0 %v486_v38 }
 0x188   :  { %466 = vmatmul.mubr.msk.bf16.vlgmr.msra.gmra.mrb[4].mxu0 %vm85_vm0, %v133_v37 }
 0x253   :  { %v195_v41 = vpop.f32.mrb[0].mxu0  ;;  %v270_v42 = vpop.f32.mrb[0].mxu1 }
 0x254   :  { %v196_v43 = vadd.f32 %v412_v39, %v195_v41  ;;  %v271_v44 = vadd.f32 %v418_v40, %v270_v42  ;;  %v451_v45 = vpop.f32.mrb[1].mxu0  ;;  %v459_v46 = vpop.f32.mrb[1].mxu1 }
 0x255   :  { %v198_v47 = vpop.f32.mrb[2].mxu0  ;;  %v273_v48 = vpop.f32.mrb[2].mxu1 }
 0x256   :  { %v430_v49 = vpack.c.bf16 %v196_v43, %v196_v43  ;;  %v432_v50 = vpack.c.bf16 %v271_v44, %v271_v44  ;;  %v199_v51 = vadd.f32 %v412_v39, %v198_v47  ;;  %v274_v52 = vadd.f32 %v418_v40, %v273_v48  ;;  %v452_v53 = vpop.f32.mrb[3].mxu0  ;;  %v460_v54 = vpop.f32.mrb[3].mxu1 }
 0x258   :  { %v431_v55 = vpack.c.bf16 %v199_v51, %v199_v51  ;;  %v433_v56 = vpack.c.bf16 %v274_v52, %v274_v52  ;;  %211 = vst.msk [vmem:[#allocation9] sm:$0xf] %vm210_vm2, %v430_v49  ;;  %285 = vst.msk [vmem:[#allocation10] sm:$0xf] %vm210_vm2, %v432_v50 }
 0x25a   :  { %212 = vst.msk [vmem:[#allocation9 + $0x4] sm:$0xf] %vm210_vm2, %v431_v55  ;;  %286 = vst.msk [vmem:[#allocation10 + $0x4] sm:$0xf] %vm210_vm2, %v433_v56 }
 0x25b   :  { %v344_v58 = vpop.f32.mrb[4].mxu0 }
 0x25c   :  { %568 = shalt.err (!%p565_p0)
}
 0x25d   :  { %s569_s17 = scalar_lea.hbm %s845_s10, 128 }
 0x25e   :  { %p570_p1 = scmp.ne.s32.totalorder %s845_s10, %s569_s17  ;;  %p573_p2 = scmp.lt.u32.totalorder %s569_s17, %s845_s10 }
 0x260   :  { %p575_p3 = pnand %p573_p2, %p570_p1 }
 0x262   :  { %578 = shalt.err (!%p575_p3)
}
 0x263   :  { %384 = dma.vmem_to_hbm [thread:$0]  %s379_s29, 128, %s845_s10, [#allocation11], %s632_s27, %s632_s27, %s633_s28   ;;  %v345_v59 = vadd.f32 %v424_v57, %v344_v58  ;;  %v467_v60 = vpop.f32.mrb[5].mxu0 }
 0x264   :  { %s579_s21 = scalar_lea.vmem %s779_s30, 128  ;;  %p584_p5 = scmp.lt.s32.totalorder %s779_s30, %s779_s30 }
 0x265   :  { %p580_p4 = scmp.ne.s32.totalorder %s779_s30, %s579_s21  ;;  %p585_p6 = scmp.lt.s32.totalorder %s579_s21, %s579_s21 }
 0x267   :  { %p586_p7 = por %p585_p6, %p584_p5 }
 0x269   :  { %p587_p8 = pnand %p586_p7, %p580_p4 }
 0x26b   :  { %590 = shalt.err (!%p587_p8)
}
 0x26c   :  { %s591_s18 = scalar_lea.hbm %s844_s9, 128 }
 0x26d   :  { %p592_p9 = scmp.ne.s32.totalorder %s844_s9, %s591_s18  ;;  %p595_p10 = scmp.lt.u32.totalorder %s591_s18, %s844_s9 }
 0x26f   :  { %p597_p11 = pnand %p595_p10, %p592_p9 }
 0x271   :  { %600 = shalt.err (!%p597_p11)
}
 0x272   :  { %372 = dma.vmem_to_hbm [thread:$0]  %s779_s30, 128, %s844_s9, [#allocation5], %s632_s27, %s632_s27, %s633_s28   ;;  %v347_v61 = vpop.f32.mrb[6].mxu0  ;;  %v434_v62 = vpack.c.bf16 %v345_v59, %v345_v59 }
 0x273   :  { %s642_s26 = smov [#allocation12]   ;;  %v348_v63 = vadd.f32 %v424_v57, %v347_v61  ;;  %v468_v0 = vpop.f32.mrb[7].mxu0 }
 0x274   :  { %s390_s5 = sshll.u32 %s642_s26, 4  ;;  %359 = vst.msk [vmem:[#allocation12] sm:$0xf] %vm210_vm2, %v434_v62  ;;  %s391_s5 = int_to_ptr.vmem [resolvable:$true] %s390_s5 }
 0x275   :  { %v435_v1 = vpack.c.bf16 %v348_v63, %v348_v63  ;;  %s601_s29 = scalar_lea.vmem %s391_s5, 128  ;;  %p606_p13 = scmp.lt.s32.totalorder %s391_s5, %s391_s5 }
 0x276   :  { %p602_p12 = scmp.ne.s32.totalorder %s391_s5, %s601_s29  ;;  %p607_p0 = scmp.lt.s32.totalorder %s601_s29, %s601_s29 }
 0x277   :  { %360 = vst.msk [vmem:[#allocation12 + $0x4] sm:$0xf] %vm210_vm2, %v435_v1 }
 0x278   :  { %p608_p1 = por %p607_p0, %p606_p13 }
 0x27a   :  { %p609_p2 = pnand %p608_p1, %p602_p12 }
 0x27c   :  { %612 = shalt.err (!%p609_p2)
}
 0x27d   :  { %s613_s30 = scalar_lea.hbm %s846_s11, 128 }
 0x27e   :  { %p614_p3 = scmp.ne.s32.totalorder %s846_s11, %s613_s30  ;;  %p617_p4 = scmp.lt.u32.totalorder %s613_s30, %s846_s11 }
 0x280   :  { %p619_p5 = pnand %p617_p4, %p614_p3 }
 0x282   :  { %622 = shalt.err (!%p619_p5)
}
 0x283   :  { %396 = dma.vmem_to_hbm [thread:$0]  %s391_s5, 128, %s846_s11, [#allocation11], %s632_s27, %s632_s27, %s633_s28  }
 0x284   :  { %627 = dma.done.wait [#allocation5], 128  }
 0x285   :  { %628 = vsyncadd [#allocation5], 4294967168 }
 0x286   :  { %629 = dma.done.wait [#allocation11], 256  }
 0x287   :  { %630 = vsyncadd [#allocation11], 4294967040 }
 0x288   :  { %406 = vsyncpa [#allocation4], 1 }
 0x289   :  { %407 = vsyncpa [#allocation7], 1 }
 0x28a   :  { %408 = vsyncpa [#allocation5], 1 }
 0x28b   :  { %409 = vsyncpa [#allocation11], 1 }

</bundles_post_ra>
